<compile_context>
chip_gen: v6e
topology: v6e:2x2x1
jax: 0.10.0
libtpu: 0.0.40
codegen_flags: <defaults>
</compile_context>

<pallas_src>
import math

import jax
import jax.numpy as jnp
from jax.experimental import pallas as pl
from jax.experimental.pallas import tpu as pltpu

_TILE_BYTES_PER_INPUT = 8 * 1024 * 1024  # ~8 MiB per input tile


def _vmem_budgets():
    """Generation-aware (tile_bytes_per_input, scoped_vmem_limit_bytes)."""
    try:
        vmem_cap = pltpu.get_tpu_info().vmem_capacity_bytes
    except Exception:
        vmem_cap = 64 * 1024 * 1024  # conservative (v7x-sized) fallback
    if vmem_cap >= 100 * 1024 * 1024:
        # v5e / v6e: 128 MiB physical VMEM -> plenty of headroom.
        return _TILE_BYTES_PER_INPUT, 64 * 1024 * 1024
    # v7x: 64 MiB physical per TensorCore.  3 arrays x 2 buffers x 8 MiB
    # = 48 MiB; 52 MiB limit keeps headroom and stays below ~56 MiB ceiling.
    return _TILE_BYTES_PER_INPUT, 52 * 1024 * 1024


def _lerp_kernel(w_ref, x_ref, e_ref, o_ref):
    # w_ref: SMEM f32 scalar = (0.5 + weight) pre-quantized to the storage
    # dtype (torch casts the weight to input dtype first), re-expressed in f32.
    # Compute in f32 (torch opmath; identity for f32 inputs) -- VPU has huge
    # slack in this HBM-bound kernel, and v5e has no bf16 VALU path.
    w = w_ref[0]
    x = x_ref[...].astype(jnp.float32)
    e = e_ref[...].astype(jnp.float32)
    o_ref[...] = (x + w * (e - x)).astype(o_ref.dtype)


def _lerp_2d(x2, e2, w_f32, tile_bytes, vmem_limit):
    """Run the lerp kernel over a lane-dense (rows, width) slab."""
    rows, width = x2.shape
    dtype = x2.dtype
    itemsize = jnp.dtype(dtype).itemsize

    # Sublane alignment: 8 for 4-byte dtypes, 16 for bf16/f16, 32 for 1-byte.
    sub = max(8, 32 // itemsize)
    block_rows = max(sub, (tile_bytes // (width * itemsize)) // sub * sub)

    if rows <= sub:
        block_rows = rows  # tiny tensor: single full-extent block (legal)
    else:
        # Never collapse to grid=(1,): keep >= 2 steps so both v7x TCs can
        # stream from HBM and writeback overlaps the next input DMA.
        half = pl.cdiv(pl.cdiv(rows, 2), sub) * sub
        block_rows = max(sub, min(block_rows, half))

    grid = (pl.cdiv(rows, block_rows),)

    cost = pl.CostEstimate(
        flops=3 * rows * width,           # sub + mul + add per element
        transcendentals=0,
        bytes_accessed=3 * rows * width * itemsize,   # 2 reads + 1 write
    )

    return pl.pallas_call(
        _lerp_kernel,
        out_shape=jax.ShapeDtypeStruct((rows, width), dtype),
        grid_spec=pltpu.PrefetchScalarGridSpec(
            num_scalar_prefetch=0,
            grid=grid,
            in_specs=[
                pl.BlockSpec(memory_space=pltpu.MemorySpace.SMEM),  # weight
                pl.BlockSpec((block_rows, width), lambda i: (i, 0)),
                pl.BlockSpec((block_rows, width), lambda i: (i, 0)),
            ],
            out_specs=pl.BlockSpec((block_rows, width), lambda i: (i, 0)),
        ),
        compiler_params=pltpu.CompilerParams(
            # If profiling ever shows a single TC active on v7x, switch this
            # axis to pltpu.CORE_PARALLEL.
            dimension_semantics=("parallel",),
            vmem_limit_bytes=vmem_limit,
        ),
        cost_estimate=cost,
    )(w_f32, x2, e2)


def lerp_pallas(x, end, weight):
    """Elementwise lerp with scalar weight parameter (weight_shape=1 case)."""
    # TODO(synk): broadcasted (non-scalar) weight_shape is not handled; only
    # the default nn.Parameter(torch.zeros(1)) scalar-weight case is supported.
    assert x.shape == end.shape, "input and end must have the same shape"
    orig_shape = x.shape
    dtype = x.dtype
    tile_bytes, vmem_limit = _vmem_budgets()

    # torch.lerp semantics: weight is cast to the input dtype before use, and
    # the actual math runs in f32 (opmath) for half dtypes.
    w_f32 = (
        (0.5 + weight.astype(jnp.float32))
        .astype(dtype)
        .astype(jnp.float32)
        .reshape((1,))
    )

    total = math.prod(orig_shape)
    x_flat = x.reshape(-1)
    e_flat = end.reshape(-1)

    if total % 128 == 0:
        # Fast path: zero-copy reshape to a lane-dense slab.
        width = 1024 if total % 1024 == 0 else 128
        out2 = _lerp_2d(
            x_flat.reshape(-1, width), e_flat.reshape(-1, width),
            w_f32, tile_bytes, vmem_limit,
        )
        return out2.reshape(orig_shape)

    # Ragged (rare): kernel over the 128-aligned prefix, <128-element tail in
    # plain jnp, then stitch.  Avoids padding both full inputs and slicing the
    # full output (which doubled HBM traffic for this bandwidth-bound op).
    aligned = (total // 128) * 128
    parts = []
    if aligned:
        width = 1024 if aligned % 1024 == 0 else 128
        main = _lerp_2d(
            x_flat[:aligned].reshape(-1, width),
            e_flat[:aligned].reshape(-1, width),
            w_f32, tile_bytes, vmem_limit,
        )
        parts.append(main.reshape(-1))
    xt = x_flat[aligned:].astype(jnp.float32)
    et = e_flat[aligned:].astype(jnp.float32)
    parts.append((xt + w_f32[0] * (et - xt)).astype(dtype))
    out_flat = jnp.concatenate(parts) if len(parts) > 1 else parts[0]
    return out_flat.reshape(orig_shape)


def _reference(x, end, weight):
    w = (0.5 + weight.astype(jnp.float32)).astype(x.dtype).astype(jnp.float32)[0]
    xf = x.astype(jnp.float32)
    ef = end.astype(jnp.float32)
    return (xf + w * (ef - xf)).astype(x.dtype)


if __name__ == "__main__":
    key = jax.random.PRNGKey(0)
    k1, k2, k3, k4, k5, k6, k7, k8 = jax.random.split(key, 8)

    # Deterministic parameter init, same as nn.Parameter(torch.zeros(1)).
    weight = jnp.zeros((1,), dtype=jnp.float32)

    # 1) Small NCHW f32 input (no-pad, single-block fast path).
    x = jax.random.normal(k1, (2, 4, 16, 16), dtype=jnp.float32)
    end = jax.random.normal(k2, (2, 4, 16, 16), dtype=jnp.float32)
    out = lerp_pallas(x, end, weight)
    jax.block_until_ready(out)
    assert jnp.allclose(out, _reference(x, end, weight), atol=1e-6), \
        "mismatch vs reference (small f32 case)"

    # 2) Larger NCHW f32 input (multi-block tiled path, grid >= 2).
    xb = jax.random.normal(k3, (4, 4, 256, 256), dtype=jnp.float32)
    eb = jax.random.normal(k4, (4, 4, 256, 256), dtype=jnp.float32)
    outb = lerp_pallas(xb, eb, weight)
    jax.block_until_ready(outb)
    assert jnp.allclose(outb, _reference(xb, eb, weight), atol=1e-6), \
        "mismatch vs reference (large f32 case)"

    # 3) bf16 input (in-kernel f32 opmath, cast-on-store path).
    xh = jax.random.normal(k5, (2, 8, 64, 64), dtype=jnp.float32).astype(jnp.bfloat16)
    eh = jax.random.normal(k6, (2, 8, 64, 64), dtype=jnp.float32).astype(jnp.bfloat16)
    outh = lerp_pallas(xh, eh, weight)
    jax.block_until_ready(outh)
    assert jnp.allclose(outh.astype(jnp.float32),
                        _reference(xh, eh, weight).astype(jnp.float32),
                        atol=1e-2), "mismatch vs reference (bf16 case)"

    # 4) Ragged size (total % 128 != 0): aligned-prefix kernel + jnp tail.
    xr = jax.random.normal(k7, (2, 3, 5, 7), dtype=jnp.float32)
    er = jax.random.normal(k8, (2, 3, 5, 7), dtype=jnp.float32)
    outr = lerp_pallas(xr, er, weight)
    jax.block_until_ready(outr)
    assert jnp.allclose(outr, _reference(xr, er, weight), atol=1e-6), \
        "mismatch vs reference (ragged case)"

    print("KERNEL_OK")
</pallas_src>

<mosaic_0001>
module attributes {stable_mosaic.version = 11 : i64} {
  func.func @_lerp_kernel(%arg0: i32, %arg1: memref<1xf32, #tpu.memory_space<smem>>, %arg2: memref<2x1024xf32, #tpu.memory_space<vmem>>, %arg3: memref<2x1024xf32, #tpu.memory_space<vmem>>, %arg4: memref<2x1024xf32, #tpu.memory_space<vmem>>) attributes {dimension_semantics = [#tpu.dimension_semantics<parallel>], iteration_bounds = array<i64: 1>, scalar_prefetch = 0 : i64, scratch_operands = 0 : i64, tpu.core_type = #tpu.core_type<tc>, window_params = [{transform_indices = @transform_0, window_bounds = array<i64: 1>}, {transform_indices = @transform_1, window_bounds = array<i64: 2, 1024>}, {transform_indices = @transform_2, window_bounds = array<i64: 2, 1024>}, {transform_indices = @transform_3, window_bounds = array<i64: 2, 1024>}]} {
    %c0 = arith.constant 0 : index
    %0 = memref.load %arg1[%c0] : memref<1xf32, #tpu.memory_space<smem>>
    %c0_0 = arith.constant 0 : index
    %c0_1 = arith.constant 0 : index
    %1 = vector.load %arg2[%c0_0, %c0_1] : memref<2x1024xf32, #tpu.memory_space<vmem>>, vector<2x1024xf32>
    %c0_2 = arith.constant 0 : index
    %c0_3 = arith.constant 0 : index
    %2 = vector.load %arg3[%c0_2, %c0_3] : memref<2x1024xf32, #tpu.memory_space<vmem>>, vector<2x1024xf32>
    %3 = arith.subf %2, %1 : vector<2x1024xf32>
    %4 = vector.broadcast %0 : f32 to vector<2x1024xf32>
    %5 = arith.mulf %4, %3 : vector<2x1024xf32>
    %6 = arith.addf %1, %5 : vector<2x1024xf32>
    %c0_4 = arith.constant 0 : index
    %c0_5 = arith.constant 0 : index
    %7 = vector.load %arg4[%c0_4, %c0_5] : memref<2x1024xf32, #tpu.memory_space<vmem>>, vector<2x1024xf32>
    tpu.vector_store %arg4[%c0_4, %c0_5], %6 {strides = array<i32>} : memref<2x1024xf32, #tpu.memory_space<vmem>>, vector<2x1024xf32>,
    return
  }
  func.func @transform_0(%arg0: i32) -> i32 {
    %c0_i32 = arith.constant 0 : i32
    %c0_i32_0 = arith.constant 0 : i32
    return %c0_i32 : i32
  }
  func.func @transform_1(%arg0: i32) -> (i32, i32) {
    %c0_i32 = arith.constant 0 : i32
    %c0_i32_0 = arith.constant 0 : i32
    return %arg0, %c0_i32 : i32, i32
  }
  func.func @transform_2(%arg0: i32) -> (i32, i32) {
    %c0_i32 = arith.constant 0 : i32
    %c0_i32_0 = arith.constant 0 : i32
    return %arg0, %c0_i32 : i32, i32
  }
  func.func @transform_3(%arg0: i32) -> (i32, i32) {
    %c0_i32 = arith.constant 0 : i32
    %c0_i32_0 = arith.constant 0 : i32
    return %arg0, %c0_i32 : i32, i32
  }
}

</mosaic_0001>

<bundles_post_ra>
// kernel: tpu_custom_call.1
= control target key start
LH: loop header
LB: loop body
LE: loop exit
PB: predicated region body
PF: predicated region fallthrough
CT: control target
= control target key end

     0   :  { %9 = vsyncpa [#allocation4], 0  ;;  %s174_s0 = inlined_call_operand.<no memory space> [shape: f32[1], index: 0, kind: input, shape index: {}]   ;;  %s175_s1 = inlined_call_operand.hbm [shape: f32[2,1024], index: 1, kind: input, shape index: {}]   ;;  %s176_s2 = inlined_call_operand.hbm [shape: f32[2,1024], index: 2, kind: input, shape index: {}]   ;;  %s177_s3 = inlined_call_operand.hbm [shape: f32[2,1024], index: 3, kind: output, shape index: {}]  }
   0x1   :  { %10 = vsyncpa [#allocation7], 0 }
   0x2   :  { %11 = vsyncpa [#allocation5], 0  ;;  %s139_s12 = smov [#allocation3]   ;;  %s140_s14 = smov [#allocation6]  }
   0x3   :  { %s20_s13 = sshll.u32 %s139_s12, 4  ;;  %s30_s15 = sshll.u32 %s140_s14, 4  ;;  %s21_s13 = int_to_ptr.vmem [resolvable:$true] %s20_s13  ;;  %s31_s15 = int_to_ptr.vmem [resolvable:$true] %s30_s15 }
   0x4   :  { %s81_s16 = scalar_lea.vmem %s21_s13, 256  ;;  %p86_p1 = scmp.lt.s32.totalorder %s21_s13, %s21_s13 }
   0x5   :  { %p82_p0 = scmp.ne.s32.totalorder %s21_s13, %s81_s16  ;;  %p87_p2 = scmp.lt.s32.totalorder %s81_s16, %s81_s16 }
   0x7   :  { %p88_p3 = por %p87_p2, %p86_p1 }
   0x9   :  { %p89_p4 = pnand %p88_p3, %p82_p0 }
   0xb   :  { %92 = shalt.err (!%p89_p4)
}
   0xc   :  { %23 = dma.hbm_to_vmem [thread:$0]  %s175_s1, 256, %s21_s13, [#allocation4]  }
   0xd   :  { %s101_s19 = scalar_lea.vmem %s31_s15, 256  ;;  %p106_p6 = scmp.lt.s32.totalorder %s31_s15, %s31_s15 }
   0xe   :  { %p102_p5 = scmp.ne.s32.totalorder %s31_s15, %s101_s19  ;;  %p107_p7 = scmp.lt.s32.totalorder %s101_s19, %s101_s19 }
  0x10   :  { %p108_p8 = por %p107_p7, %p106_p6 }
  0x12   :  { %p109_p9 = pnand %p108_p8, %p102_p5 }
  0x14   :  { %112 = shalt.err (!%p109_p9)
}
  0x15   :  { %33 = dma.hbm_to_vmem [thread:$0]  %s176_s2, 256, %s31_s15, [#allocation7]  }
  0x16   :  { %133 = dma.done.wait [#allocation4], 256  }
  0x17   :  { %134 = vsyncadd [#allocation4], 4294967040 }
  0x18   :  { %135 = dma.done.wait [#allocation7], 256  }
  0x19   :  { %136 = vsyncadd [#allocation7], 4294967040  ;;  %v41_v0 = vld [vmem:[#allocation3] sm:$0xff]  ;;  %v43_v1 = vld [vmem:[#allocation6] sm:$0xff]  ;;  %v47_v2 = vstv %s174_s0  ;;  %s141_s1 = smov [#allocation8]  }
  0x1a   :  { %v42_v3 = vld [vmem:[#allocation3 + $0x8] sm:$0xff]  ;;  %v45_v4 = vsub.f32 %v43_v1, %v41_v0  ;;  %v44_v5 = vld [vmem:[#allocation6 + $0x8] sm:$0xff]  ;;  %s60_s24 = sshll.u32 %s141_s1, 4  ;;  %s61_s24 = int_to_ptr.vmem [resolvable:$true] %s60_s24 }
  0x1b   :  { %v46_v6 = vsub.f32 %v44_v5, %v42_v3  ;;  %s113_s2 = scalar_lea.vmem %s61_s24, 256  ;;  %p118_p11 = scmp.lt.s32.totalorder %s61_s24, %s61_s24 }
  0x1c   :  { %v48_v7 = vmul.f32 %v47_v2, %v45_v4  ;;  %p114_p10 = scmp.ne.s32.totalorder %s61_s24, %s113_s2  ;;  %p119_p12 = scmp.lt.s32.totalorder %s113_s2, %s113_s2 }
  0x1d   :  { %v49_v8 = vmul.f32 %v47_v2, %v46_v6 }
  0x1e   :  { %v50_v9 = vadd.f32 %v48_v7, %v41_v0  ;;  %p120_p13 = por %p119_p12, %p118_p11 }
  0x1f   :  { %v51_v10 = vadd.f32 %v49_v8, %v42_v3 }
  0x20   :  { %52 = vst [vmem:[#allocation8] sm:$0xff] %v50_v9  ;;  %p121_p0 = pnand %p120_p13, %p114_p10 }
  0x21   :  { %53 = vst [vmem:[#allocation8 + $0x8] sm:$0xff] %v51_v10 }
  0x22   :  { %124 = shalt.err (!%p121_p0)
}
  0x23   :  { %63 = dma.vmem_to_hbm [thread:$0]  %s61_s24, 256, %s177_s3, [#allocation5]  }
  0x24   :  { %137 = dma.done.wait [#allocation5], 256  }
  0x25   :  { %138 = vsyncadd [#allocation5], 4294967040 }
  0x26   :  { %67 = vsyncpa [#allocation4], 1 }
  0x27   :  { %68 = vsyncpa [#allocation7], 1 }
  0x28   :  { %69 = vsyncpa [#allocation5], 1 }

</bundles_post_ra>
